<compile_context>
chip_gen: v7x
topology: tpu7x:2x2x1
jax: 0.10.0
libtpu: 0.0.40
codegen_flags: <defaults>
</compile_context>

<pallas_src>
import functools

import numpy as np
import jax
import jax.numpy as jnp
from jax.experimental import pallas as pl
from jax.experimental.pallas import tpu as pltpu

_TM = 512           # row (dst) tile for large graphs
_TK = 1024          # contraction (src) tile for large graphs
_VMEM_LIMIT = 48 * 1024 * 1024   # < v7x's 64 MiB physical VMEM, > default scoped


def _round_up(v, m):
    return ((v + m - 1) // m) * m


def _choose_tiles(n):
    """Pad the dst and src axes of (A+I) independently and pick tiles.

    Returns (n_dst_pad, n_src_pad, tm, tk) with n_dst_pad % tm == 0 and
    n_src_pad % tk == 0.  tm is a multiple of 32 (int8 sublane packing) and tk
    a multiple of 128 (lanes).  Mid-sized graphs get exactly 2 row blocks so
    the "parallel" grid axis keeps both v7x TensorCores busy.
    """
    n = max(int(n), 1)
    # src / contraction axis (lanes of A, rows of x)
    if n <= _TK:
        n_src = _round_up(n, 128)
        tk = n_src
    else:
        n_src = _round_up(n, _TK)
        tk = _TK
    # dst / row axis (sublanes of A, rows of the output)
    if n <= 64:
        n_dst = _round_up(n, 32)
        tm = n_dst                       # graph too small to split across cores
    elif n <= 2 * _TM:
        n_dst = _round_up(n, 64)
        tm = n_dst // 2                  # 2 row blocks -> megacore split on v7x
    else:
        n_dst = _round_up(n, _TM)
        tm = _TM
    return n_dst, n_src, tm, tk


def _elu(v):
    # torch.nn.ELU(alpha=1.0); transcendental math stays f32 (no bf16 EUP on v5e).
    return jnp.where(v > 0.0, v, jnp.exp(jnp.minimum(v, 0.0)) - 1.0)


# ----------------------------------------------------------------------------
# Tiled GIN layer kernels:  acc = sum_k  (A+I)[i,k] @ x[k]   (bf16 MXU, f32 acc)
# epilogue (k == last):      y = ELU( Lin2( ELU( Lin1_bnfolded(acc) ) ) )
# pre-layer variant additionally emits per-node edge-score partials y @ Ws.
# ----------------------------------------------------------------------------
def _gin_mlp(agg, w1_ref, b1_ref, w2_ref, b2_ref):
    # Lin1 (+ folded eval-mode BatchNorm) -> ELU -> Lin2 -> outer ELU
    h = jnp.dot(agg, w1_ref[...], preferred_element_type=jnp.float32) + b1_ref[...]
    h = _elu(h)
    h = jnp.dot(h, w2_ref[...], preferred_element_type=jnp.float32) + b2_ref[...]
    return _elu(h)


def _gin_accumulate(mask_ref, a_ref, x_ref, acc_ref, tk):
    i = pl.program_id(0)
    k = pl.program_id(1)
    nk = pl.num_programs(1)

    @pl.when(k == 0)
    def _():
        acc_ref[...] = jnp.zeros_like(acc_ref)

    # Skip all-zero adjacency tiles (batched graphs are block-diagonal).
    @pl.when(mask_ref[i * nk + k] > 0)
    def _():
        a = a_ref[...].astype(jnp.bfloat16)          # int8 -> bf16 (exact ints)
        koff = pl.multiple_of(k * tk, tk)
        xk = x_ref[pl.ds(koff, tk), :]               # x is resident in VMEM
        acc_ref[...] += jnp.dot(a, xk, preferred_element_type=jnp.float32)


def gin_kernel(mask_ref, a_ref, x_ref, w1_ref, b1_ref, w2_ref, b2_ref,
               o_ref, acc_ref, *, tk):
    _gin_accumulate(mask_ref, a_ref, x_ref, acc_ref, tk)

    @pl.when(pl.program_id(1) == pl.num_programs(1) - 1)
    def _():
        o_ref[...] = _gin_mlp(acc_ref[...], w1_ref, b1_ref, w2_ref, b2_ref)


def gin_edge_kernel(mask_ref, a_ref, x_ref, w1_ref, b1_ref, w2_ref, b2_ref,
                    ws_ref, o_ref, sc_ref, acc_ref, *, tk):
    _gin_accumulate(mask_ref, a_ref, x_ref, acc_ref, tk)

    @pl.when(pl.program_id(1) == pl.num_programs(1) - 1)
    def _():
        y = _gin_mlp(acc_ref[...], w1_ref, b1_ref, w2_ref, b2_ref)
        o_ref[...] = y
        # Per-node edge-score partials: col 0 = y@Wp[:H], col 1 = y@Wp[H:].
        # Ws is zero-padded to 128 lanes so the store is lane-dense (no vst.msk).
        sc_ref[...] = jnp.dot(y, ws_ref[...], preferred_element_type=jnp.float32)


def gin_layer(mask, a, x, w1, b1, w2, b2, ws=None, *, tm, tk):
    n_dst, n_src = a.shape
    f = x.shape[1]
    h = w1.shape[1]
    grid = (n_dst // tm, n_src // tk)

    in_specs = [
        pl.BlockSpec((tm, tk), lambda i, k, m: (i, k)),     # (A+I) tile, int8
        pl.BlockSpec((n_src, f), lambda i, k, m: (0, 0)),   # x fully VMEM-resident
        pl.BlockSpec((f, h), lambda i, k, m: (0, 0)),       # W1 (BN folded)
        pl.BlockSpec((1, h), lambda i, k, m: (0, 0)),       # b1 (BN folded)
        pl.BlockSpec((h, h), lambda i, k, m: (0, 0)),       # W2
        pl.BlockSpec((1, h), lambda i, k, m: (0, 0)),       # b2
    ]
    inputs = [mask, a, x, w1, b1, w2, b2]

    if ws is not None:
        sw = ws.shape[1]                                    # 128 (zero padded)
        in_specs.append(pl.BlockSpec((h, sw), lambda i, k, m: (0, 0)))
        inputs.append(ws)
        kernel = functools.partial(gin_edge_kernel, tk=tk)
        out_shape = (jax.ShapeDtypeStruct((n_dst, h), jnp.float32),
                     jax.ShapeDtypeStruct((n_dst, sw), jnp.float32))
        out_specs = (pl.BlockSpec((tm, h), lambda i, k, m: (i, 0)),
                     pl.BlockSpec((tm, sw), lambda i, k, m: (i, 0)))
    else:
        kernel = functools.partial(gin_kernel, tk=tk)
        out_shape = jax.ShapeDtypeStruct((n_dst, h), jnp.float32)
        out_specs = pl.BlockSpec((tm, h), lambda i, k, m: (i, 0))

    return pl.pallas_call(
        kernel,
        out_shape=out_shape,
        grid_spec=pltpu.PrefetchScalarGridSpec(
            num_scalar_prefetch=1,                          # per-tile nnz mask
            grid=grid,
            in_specs=in_specs,
            out_specs=out_specs,
            scratch_shapes=[pltpu.VMEM((tm, f), jnp.float32)],
        ),
        compiler_params=pltpu.CompilerParams(
            dimension_semantics=("parallel", "arbitrary"),
            vmem_limit_bytes=_VMEM_LIMIT,
        ),
    )(*inputs)


# ----------------------------------------------------------------------------
# Readout kernel: final MLP([h, h, h//2, out], dropout=0.5 -> id in eval)
#                 + log_softmax.  G (num graphs) is tiny -> whole-VMEM call.
# ----------------------------------------------------------------------------
def readout_kernel(g_ref, w1_ref, b1_ref, w2_ref, b2_ref, w3_ref, b3_ref, o_ref):
    h = _elu(jnp.dot(g_ref[...], w1_ref[...], preferred_element_type=jnp.float32)
             + b1_ref[...])
    h = _elu(jnp.dot(h, w2_ref[...], preferred_element_type=jnp.float32)
             + b2_ref[...])
    h = jnp.dot(h, w3_ref[...], preferred_element_type=jnp.float32) + b3_ref[...]
    m = jnp.max(h, axis=-1, keepdims=True)
    lse = jnp.log(jnp.sum(jnp.exp(h - m), axis=-1, keepdims=True)) + m
    o_ref[...] = h - lse                          # log_softmax(x, dim=-1)


def readout(g, w1, b1, w2, b2, w3, b3):
    inputs = (g, w1, b1, w2, b2, w3, b3)
    return pl.pallas_call(
        readout_kernel,
        out_shape=jax.ShapeDtypeStruct((g.shape[0], w3.shape[1]), jnp.float32),
        in_specs=[pl.BlockSpec(memory_space=pltpu.MemorySpace.VMEM)] * len(inputs),
        out_specs=pl.BlockSpec(memory_space=pltpu.MemorySpace.VMEM),
    )(*inputs)


# ----------------------------------------------------------------------------
# Device-side graph glue (built inside jit; no f32 adjacency materialization)
# ----------------------------------------------------------------------------
def _dense_adj_plus_eye(src, dst, n_dst, n_src):
    # (A + I) built directly in int8 (entries are exact small integers); one
    # matmul then gives GIN's (1+eps)*x_i + sum_j x_j with eps=0.  Padded
    # diagonal entries are harmless: the padded x rows are zero.
    a = jnp.zeros((n_dst, n_src), jnp.int8)
    a = a.at[dst, src].add(1)
    d = jnp.arange(min(n_dst, n_src), dtype=jnp.int32)
    a = a.at[d, d].add(1)
    return a


def _block_mask(src, dst, n_dst, n_src, tm, tk):
    # int32 per-tile nnz counts, flattened row-major; scalar-prefetched into
    # SMEM so the kernel skips all-zero (A+I) tiles of block-diagonal batches.
    ni, nk = n_dst // tm, n_src // tk
    m = jnp.zeros((ni * nk,), jnp.int32)
    m = m.at[(dst // tm) * nk + (src // tk)].add(1)
    d = jnp.arange(min(n_dst, n_src), dtype=jnp.int32)
    m = m.at[(d // tm) * nk + (d // tk)].add(1)
    return m


def grouped_softmax(raw, dst, num_nodes):
    # torch_geometric.utils.softmax(raw, index=edge_index[1])
    seg_max = jax.ops.segment_max(raw, dst, num_segments=num_nodes)
    seg_max = jnp.where(jnp.isfinite(seg_max), seg_max, 0.0)
    ex = jnp.exp(raw - seg_max[dst])
    seg_sum = jax.ops.segment_sum(ex, dst, num_segments=num_nodes) + 1e-16
    return ex / seg_sum[dst]


@functools.partial(jax.jit, static_argnames=("n", "n_dst", "n_src", "tm", "tk"))
def pre_segment(p, x, src, dst, *, n, n_dst, n_src, tm, tk):
    """pre GINConv (+ outer ELU) fused with per-node edge-score partials."""
    a = _dense_adj_plus_eye(src, dst, n_dst, n_src)
    mask = _block_mask(src, dst, n_dst, n_src, tm, tk)
    xp = jnp.zeros((n_src, x.shape[1]), jnp.bfloat16).at[:n].set(
        x.astype(jnp.bfloat16))
    y_pad, sc_pad = gin_layer(mask, a, xp, p["pre_w1f"], p["pre_b1f"],
                              p["pre_w2"], p["pre_b2"], p["pool_ws"],
                              tm=tm, tk=tk)
    y = y_pad[:n]
    sc = sc_pad[:n, :2]
    # raw_e = x_src . Wp[:H] + x_dst . Wp[H:] + b   (== Linear(cat[x_src, x_dst]))
    raw = sc[src, 0] + sc[dst, 1] + p["pool_b"][0, 0]
    score = grouped_softmax(raw, dst, n) + 0.5          # add_to_edge_score
    return y, score


@functools.partial(jax.jit,
                   static_argnames=("k_dst", "k_src", "num_graphs", "tm", "tk"))
def post_segment(p, y, cluster, cluster_score_pad, new_src, new_dst,
                 new_batch_pad, *, k_dst, k_src, num_graphs, tm, tk):
    """cluster pooling -> post GINConv -> global_add_pool -> MLP -> log_softmax."""
    # EdgePooling aggregation: new_x = segment_sum(x over cluster) * cluster_score
    xc = jax.ops.segment_sum(y, cluster, num_segments=k_src)
    xc = (xc * cluster_score_pad[:, None]).astype(jnp.bfloat16)
    a2 = _dense_adj_plus_eye(new_src, new_dst, k_dst, k_src)
    mask = _block_mask(new_src, new_dst, k_dst, k_src, tm, tk)
    xp = gin_layer(mask, a2, xc, p["post_w1"], p["post_b1"],
                   p["post_w2"], p["post_b2"], None, tm=tm, tk=tk)
    # Padded / garbage rows are routed to a dummy graph id and dropped, so the
    # cluster count k never enters the traced graph (no per-k recompiles).
    g = jax.ops.segment_sum(xp, new_batch_pad, num_segments=num_graphs + 1)
    g = g[:num_graphs]
    return readout(g, p["mlp_w1"], p["mlp_b1"], p["mlp_w2"], p["mlp_b2"],
                   p["mlp_w3"], p["mlp_b3"])


# ----------------------------------------------------------------------------
# Host-side EdgePooling bookkeeping (inherently sequential greedy merge)
# ----------------------------------------------------------------------------
def greedy_edge_merge(edge_score, edge_index, num_nodes):
    # TODO(synk): EdgePooling's greedy edge contraction is data-dependent and
    # sequential; executed on host (numpy), not inside a Pallas kernel.
    order = np.argsort(-edge_score, kind="stable")
    cluster = -np.ones(num_nodes, dtype=np.int64)
    remaining = np.ones(num_nodes, dtype=bool)
    cluster_score = []
    k = 0
    for eidx in order:
        s, t = int(edge_index[0, eidx]), int(edge_index[1, eidx])
        if not remaining[s] or not remaining[t]:
            continue
        cluster[s] = k
        remaining[s] = False
        if s != t:
            cluster[t] = k
            remaining[t] = False
        cluster_score.append(float(edge_score[eidx]))
        k += 1
    for nnode in range(num_nodes):
        if remaining[nnode]:
            cluster[nnode] = k
            cluster_score.append(1.0)            # un-merged nodes get score 1
            k += 1
    return cluster, np.asarray(cluster_score, dtype=np.float32), k


def coalesce_edges(edge_index):
    pairs = np.unique(edge_index.T, axis=0)
    return pairs.T


# ----------------------------------------------------------------------------
# Parameter init (deterministic, Linear-style uniform init; BN + bias folded)
# ----------------------------------------------------------------------------
def init_params(key, in_channels, hidden, out_channels):
    ks = jax.random.split(key, 8)

    def lin(k, fan_in, fan_out):
        k1, k2 = jax.random.split(k)
        bound = 1.0 / np.sqrt(fan_in)
        w = jax.random.uniform(k1, (fan_in, fan_out), jnp.float32, -bound, bound)
        b = jax.random.uniform(k2, (1, fan_out), jnp.float32, -bound, bound)
        return w, b

    p = {}
    # pre GIN layer: MLP([in, h, h]) with BatchNorm after the first Linear.
    w1, b1 = lin(ks[0], in_channels, hidden)
    # Fold eval-mode BatchNorm (running_mean=0, running_var=1, gamma=1, beta=0)
    # and the Linear bias into W1/b1:  scale = 1/sqrt(var + eps).
    # TODO(synk): with real trained BN stats, recompute scale/shift here.
    bn_scale = jnp.float32(1.0 / np.sqrt(1.0 + 1e-5))
    p["pre_w1f"] = w1 * bn_scale
    p["pre_b1f"] = b1 * bn_scale
    p["pre_w2"], p["pre_b2"] = lin(ks[1], hidden, hidden)
    # EdgePooling(h): Linear(2h, 1), split into per-node partial-score columns
    # and zero-padded to 128 lanes so the kernel's score store is lane-dense.
    pool_w, pool_b = lin(ks[2], 2 * hidden, 1)
    ws = jnp.concatenate([pool_w[:hidden], pool_w[hidden:]], axis=1)   # [H, 2]
    p["pool_ws"] = jnp.zeros((hidden, 128), jnp.float32).at[:, :2].set(ws)
    p["pool_b"] = pool_b
    # post GIN layer: MLP([h, h, h], norm=None)
    p["post_w1"], p["post_b1"] = lin(ks[3], hidden, hidden)
    p["post_w2"], p["post_b2"] = lin(ks[4], hidden, hidden)
    # final MLP([h, h, h//2, out], norm=None, dropout=0.5 -> identity in eval)
    p["mlp_w1"], p["mlp_b1"] = lin(ks[5], hidden, hidden)
    p["mlp_w2"], p["mlp_b2"] = lin(ks[6], hidden, hidden // 2)
    p["mlp_w3"], p["mlp_b3"] = lin(ks[7], hidden // 2, out_channels)
    return p


# ----------------------------------------------------------------------------
# Full forward pass
# ----------------------------------------------------------------------------
def edge_pool_gin_forward(p, x, edge_index, batch, num_graphs):
    n = int(x.shape[0])
    edge_index = np.asarray(edge_index)
    batch = np.asarray(batch)
    src = jnp.asarray(edge_index[0], jnp.int32)
    dst = jnp.asarray(edge_index[1], jnp.int32)

    # ---- pre GINConv layer + edge scores (single jitted device segment) ----
    n_dst, n_src, tm, tk = _choose_tiles(n)
    y, score = pre_segment(p, jnp.asarray(x, jnp.float32), src, dst,
                           n=n, n_dst=n_dst, n_src=n_src, tm=tm, tk=tk)

    # ---- EdgePooling greedy merge (host; the single host sync) ----
    score_np = np.asarray(score)
    cluster, cluster_score, k = greedy_edge_merge(score_np, edge_index, n)
    new_edge_index = coalesce_edges(cluster[edge_index])
    # TODO(synk): bucket the coalesced edge count as well if recompiles of the
    # post segment matter in a high-rate inference loop.

    # ---- post GINConv + global_add_pool + MLP + log_softmax (jitted) ----
    k_dst, k_src, tm2, tk2 = _choose_tiles(k)
    cs_pad = np.zeros(k_src, np.float32)
    cs_pad[:k] = cluster_score
    nb_pad = np.full(k_dst, num_graphs, dtype=np.int32)   # dummy graph for pads
    nb_pad[cluster] = batch
    logp = post_segment(
        p, y,
        jnp.asarray(cluster, jnp.int32),
        jnp.asarray(cs_pad),
        jnp.asarray(new_edge_index[0], jnp.int32),
        jnp.asarray(new_edge_index[1], jnp.int32),
        jnp.asarray(nb_pad, jnp.int32),
        k_dst=k_dst, k_src=k_src, num_graphs=num_graphs, tm=tm2, tk=tk2)
    aux_loss = 0.0
    return logp, aux_loss


# ----------------------------------------------------------------------------
if __name__ == "__main__":
    key = jax.random.PRNGKey(0)
    kx, kp = jax.random.split(key)

    in_channels, hidden, out_channels = 8, 32, 4
    num_graphs, nodes_per_graph = 2, 8
    n = num_graphs * nodes_per_graph

    # node features
    x = jax.random.normal(kx, (n, in_channels), jnp.float32)

    # two disjoint bidirectional ring graphs
    src, dst = [], []
    for g in range(num_graphs):
        off = g * nodes_per_graph
        for i in range(nodes_per_graph):
            j = (i + 1) % nodes_per_graph
            src += [off + i, off + j]
            dst += [off + j, off + i]
    edge_index = np.array([src, dst], dtype=np.int64)           # [2, 32]
    batch = np.repeat(np.arange(num_graphs), nodes_per_graph)   # [16]

    params = init_params(kp, in_channels, hidden, out_channels)

    logp, aux = edge_pool_gin_forward(params, x, edge_index, batch, num_graphs)
    logp = jax.block_until_ready(logp)

    assert logp.shape == (num_graphs, out_channels)
    assert np.all(np.isfinite(np.asarray(logp)))
    assert np.allclose(np.exp(np.asarray(logp)).sum(-1), 1.0, atol=1e-4)
    print("KERNEL_OK")
</pallas_src>

<mosaic_0001>
module attributes {stable_mosaic.version = 11 : i64} {
  func.func private @main(%arg0: i32) attributes {dimension_semantics = [#tpu.dimension_semantics<core_parallel>], iteration_bounds = array<i64: 2>, tpu.core_type = #tpu.core_type<sc_scalar_subcore>, window_params = []} {
    return
  }
}

module attributes {stable_mosaic.version = 11 : i64} {
  func.func private @main(%arg0: i32) attributes {dimension_semantics = [#tpu.dimension_semantics<core_parallel>], iteration_bounds = array<i64: 2>, tpu.core_type = #tpu.core_type<sc_scalar_subcore>, window_params = []} {
    return
  }
}

module attributes {stable_mosaic.version = 11 : i64} {
  func.func @gin_edge_kernel(%arg0: i32, %arg1: i32, %arg2: memref<1xi32, #tpu.memory_space<smem>>, %arg3: memref<32x128xi8, #tpu.memory_space<vmem>>, %arg4: memref<128x8xbf16, #tpu.memory_space<vmem>>, %arg5: memref<8x32xf32, #tpu.memory_space<vmem>>, %arg6: memref<1x32xf32, #tpu.memory_space<vmem>>, %arg7: memref<32x32xf32, #tpu.memory_space<vmem>>, %arg8: memref<1x32xf32, #tpu.memory_space<vmem>>, %arg9: memref<32x128xf32, #tpu.memory_space<vmem>>, %arg10: memref<32x32xf32, #tpu.memory_space<vmem>>, %arg11: memref<32x128xf32, #tpu.memory_space<vmem>>, %arg12: memref<32x8xf32, #tpu.memory_space<vmem>>) attributes {dimension_semantics = [#tpu.dimension_semantics<parallel>, #tpu.dimension_semantics<arbitrary>], iteration_bounds = array<i64: 1, 1>, scalar_prefetch = 1 : i64, scratch_operands = 1 : i64, tpu.core_type = #tpu.core_type<tc>, window_params = [{transform_indices = @transform_0, window_bounds = array<i64: 32, 128>}, {pipeline_mode = #tpu.pipeline_mode<synchronous>, transform_indices = @transform_1, window_bounds = array<i64: 128, 8>}, {pipeline_mode = #tpu.pipeline_mode<synchronous>, transform_indices = @transform_2, window_bounds = array<i64: 8, 32>}, {pipeline_mode = #tpu.pipeline_mode<synchronous>, transform_indices = @transform_3, window_bounds = array<i64: 1, 32>}, {pipeline_mode = #tpu.pipeline_mode<synchronous>, transform_indices = @transform_4, window_bounds = array<i64: 32, 32>}, {pipeline_mode = #tpu.pipeline_mode<synchronous>, transform_indices = @transform_5, window_bounds = array<i64: 1, 32>}, {pipeline_mode = #tpu.pipeline_mode<synchronous>, transform_indices = @transform_6, window_bounds = array<i64: 32, 128>}, {transform_indices = @transform_7, window_bounds = array<i64: 32, 32>}, {transform_indices = @transform_8, window_bounds = array<i64: 32, 128>}]} {
    %c0_i32 = arith.constant 0 : i32
    %0 = arith.cmpi eq, %arg1, %c0_i32 : i32
    %1 = arith.extui %0 : i1 to i32
    %c0_i32_0 = arith.constant 0 : i32
    %2 = arith.cmpi ne, %1, %c0_i32_0 : i32
    scf.if %2 {
      %cst = arith.constant 0.000000e+00 : f32
      %13 = vector.broadcast %cst : f32 to vector<32x8xf32>
      %c0 = arith.constant 0 : index
      %c0_5 = arith.constant 0 : index
      %14 = vector.load %arg12[%c0, %c0_5] : memref<32x8xf32, #tpu.memory_space<vmem>>, vector<32x8xf32>
      tpu.vector_store %arg12[%c0, %c0_5], %13 {strides = array<i32>} : memref<32x8xf32, #tpu.memory_space<vmem>>, vector<32x8xf32>,
    } else {
    }
    %c1_i32 = arith.constant 1 : i32
    %3 = arith.muli %arg0, %c1_i32 : i32
    %4 = arith.addi %3, %arg1 : i32
    %5 = arith.index_cast %4 : i32 to index
    %6 = memref.load %arg2[%5] : memref<1xi32, #tpu.memory_space<smem>>
    %c0_i32_1 = arith.constant 0 : i32
    %7 = arith.cmpi sgt, %6, %c0_i32_1 : i32
    %8 = arith.extui %7 : i1 to i32
    %c0_i32_2 = arith.constant 0 : i32
    %9 = arith.cmpi ne, %8, %c0_i32_2 : i32
    scf.if %9 {
      %c0 = arith.constant 0 : index
      %c0_5 = arith.constant 0 : index
      %13 = vector.load %arg3[%c0, %c0_5] : memref<32x128xi8, #tpu.memory_space<vmem>>, vector<32x128xi8>
      %14 = arith.sitofp %13 : vector<32x128xi8> to vector<32x128xbf16>
      %c128_i32 = arith.constant 128 : i32
      %15 = arith.muli %arg1, %c128_i32 : i32
      %16 = tpu.assume_multiple %15, 128 : i32
      %17 = arith.index_cast %16 : i32 to index
      %c0_6 = arith.constant 0 : index
      %18 = vector.load %arg4[%17, %c0_6] : memref<128x8xbf16, #tpu.memory_space<vmem>>, vector<128x8xbf16>
      %c0_7 = arith.constant 0 : index
      %c0_8 = arith.constant 0 : index
      %19 = vector.load %arg12[%c0_7, %c0_8] : memref<32x8xf32, #tpu.memory_space<vmem>>, vector<32x8xf32>
      %cst = arith.constant dense<0.000000e+00> : vector<32x8xf32>
      %20 = tpu.matmul %14, %18, %cst {dimension_numbers = #tpu.dot_dimension_numbers<[1], [0], [0], [1], [0, 0, 1, 1], [], []>} : vector<32x128xbf16>, vector<128x8xbf16>, vector<32x8xf32> -> vector<32x8xf32>
      %21 = arith.addf %19, %20 : vector<32x8xf32>
      %c0_9 = arith.constant 0 : index
      %c0_10 = arith.constant 0 : index
      %22 = vector.load %arg12[%c0_9, %c0_10] : memref<32x8xf32, #tpu.memory_space<vmem>>, vector<32x8xf32>
      tpu.vector_store %arg12[%c0_9, %c0_10], %21 {strides = array<i32>} : memref<32x8xf32, #tpu.memory_space<vmem>>, vector<32x8xf32>,
    } else {
    }
    %c0_i32_3 = arith.constant 0 : i32
    %10 = arith.cmpi eq, %arg1, %c0_i32_3 : i32
    %11 = arith.extui %10 : i1 to i32
    %c0_i32_4 = arith.constant 0 : i32
    %12 = arith.cmpi ne, %11, %c0_i32_4 : i32
    scf.if %12 {
      %c0 = arith.constant 0 : index
      %c0_5 = arith.constant 0 : index
      %13 = vector.load %arg12[%c0, %c0_5] : memref<32x8xf32, #tpu.memory_space<vmem>>, vector<32x8xf32>
      %c0_6 = arith.constant 0 : index
      %c0_7 = arith.constant 0 : index
      %14 = vector.load %arg5[%c0_6, %c0_7] : memref<8x32xf32, #tpu.memory_space<vmem>>, vector<8x32xf32>
      %cst = arith.constant dense<0.000000e+00> : vector<32x32xf32>
      %15 = tpu.matmul %13, %14, %cst {dimension_numbers = #tpu.dot_dimension_numbers<[1], [0], [0], [1], [0, 0, 1, 1], [], []>} : vector<32x8xf32>, vector<8x32xf32>, vector<32x32xf32> -> vector<32x32xf32>
      %c0_8 = arith.constant 0 : index
      %c0_9 = arith.constant 0 : index
      %16 = vector.load %arg6[%c0_8, %c0_9] : memref<1x32xf32, #tpu.memory_space<vmem>>, vector<1x32xf32>
      %17 = vector.broadcast %16 : vector<1x32xf32> to vector<32x32xf32>
      %18 = arith.addf %15, %17 : vector<32x32xf32>
      %cst_10 = arith.constant 0.000000e+00 : f32
      %19 = vector.broadcast %cst_10 : f32 to vector<32x32xf32>
      %20 = arith.cmpf ogt, %18, %19 : vector<32x32xf32>
      %cst_11 = arith.constant 0.000000e+00 : f32
      %21 = vector.broadcast %cst_11 : f32 to vector<32x32xf32>
      %22 = arith.minimumf %18, %21 : vector<32x32xf32>
      %23 = math.exp %22 : vector<32x32xf32>
      %cst_12 = arith.constant 1.000000e+00 : f32
      %24 = vector.broadcast %cst_12 : f32 to vector<32x32xf32>
      %25 = arith.subf %23, %24 : vector<32x32xf32>
      %26 = arith.select %20, %18, %25 : vector<32x32xi1>, vector<32x32xf32>
      %c0_13 = arith.constant 0 : index
      %c0_14 = arith.constant 0 : index
      %27 = vector.load %arg7[%c0_13, %c0_14] : memref<32x32xf32, #tpu.memory_space<vmem>>, vector<32x32xf32>
      %cst_15 = arith.constant dense<0.000000e+00> : vector<32x32xf32>
      %28 = tpu.matmul %26, %27, %cst_15 {dimension_numbers = #tpu.dot_dimension_numbers<[1], [0], [0], [1], [0, 0, 1, 1], [], []>} : vector<32x32xf32>, vector<32x32xf32>, vector<32x32xf32> -> vector<32x32xf32>
      %c0_16 = arith.constant 0 : index
      %c0_17 = arith.constant 0 : index
      %29 = vector.load %arg8[%c0_16, %c0_17] : memref<1x32xf32, #tpu.memory_space<vmem>>, vector<1x32xf32>
      %30 = vector.broadcast %29 : vector<1x32xf32> to vector<32x32xf32>
      %31 = arith.addf %28, %30 : vector<32x32xf32>
      %cst_18 = arith.constant 0.000000e+00 : f32
      %32 = vector.broadcast %cst_18 : f32 to vector<32x32xf32>
      %33 = arith.cmpf ogt, %31, %32 : vector<32x32xf32>
      %cst_19 = arith.constant 0.000000e+00 : f32
      %34 = vector.broadcast %cst_19 : f32 to vector<32x32xf32>
      %35 = arith.minimumf %31, %34 : vector<32x32xf32>
      %36 = math.exp %35 : vector<32x32xf32>
      %cst_20 = arith.constant 1.000000e+00 : f32
      %37 = vector.broadcast %cst_20 : f32 to vector<32x32xf32>
      %38 = arith.subf %36, %37 : vector<32x32xf32>
      %39 = arith.select %33, %31, %38 : vector<32x32xi1>, vector<32x32xf32>
      %c0_21 = arith.constant 0 : index
      %c0_22 = arith.constant 0 : index
      %40 = vector.load %arg10[%c0_21, %c0_22] : memref<32x32xf32, #tpu.memory_space<vmem>>, vector<32x32xf32>
      tpu.vector_store %arg10[%c0_21, %c0_22], %39 {strides = array<i32>} : memref<32x32xf32, #tpu.memory_space<vmem>>, vector<32x32xf32>,
      %c0_23 = arith.constant 0 : index
      %c0_24 = arith.constant 0 : index
      %41 = vector.load %arg9[%c0_23, %c0_24] : memref<32x128xf32, #tpu.memory_space<vmem>>, vector<32x128xf32>
      %cst_25 = arith.constant dense<0.000000e+00> : vector<32x128xf32>
      %42 = tpu.matmul %39, %41, %cst_25 {dimension_numbers = #tpu.dot_dimension_numbers<[1], [0], [0], [1], [0, 0, 1, 1], [], []>} : vector<32x32xf32>, vector<32x128xf32>, vector<32x128xf32> -> vector<32x128xf32>
      %c0_26 = arith.constant 0 : index
      %c0_27 = arith.constant 0 : index
      %43 = vector.load %arg11[%c0_26, %c0_27] : memref<32x128xf32, #tpu.memory_space<vmem>>, vector<32x128xf32>
      tpu.vector_store %arg11[%c0_26, %c0_27], %42 {strides = array<i32>} : memref<32x128xf32, #tpu.memory_space<vmem>>, vector<32x128xf32>,
    } else {
    }
    return
  }
  func.func @transform_0(%arg0: i32, %arg1: i32, %arg2: memref<1xi32, #tpu.memory_space<smem>>) -> (i32, i32) {
    %c0_i32 = arith.constant 0 : i32
    return %arg0, %arg1 : i32, i32
  }
  func.func @transform_1(%arg0: i32, %arg1: i32, %arg2: memref<1xi32, #tpu.memory_space<smem>>) -> (i32, i32) {
    %c0_i32 = arith.constant 0 : i32
    %c0_i32_0 = arith.constant 0 : i32
    %c0_i32_1 = arith.constant 0 : i32
    return %c0_i32, %c0_i32_0 : i32, i32
  }
  func.func @transform_2(%arg0: i32, %arg1: i32, %arg2: memref<1xi32, #tpu.memory_space<smem>>) -> (i32, i32) {
    %c0_i32 = arith.constant 0 : i32
    %c0_i32_0 = arith.constant 0 : i32
    %c0_i32_1 = arith.constant 0 : i32
    return %c0_i32, %c0_i32_0 : i32, i32
  }
  func.func @transform_3(%arg0: i32, %arg1: i32, %arg2: memref<1xi32, #tpu.memory_space<smem>>) -> (i32, i32) {
    %c0_i32 = arith.constant 0 : i32
    %c0_i32_0 = arith.constant 0 : i32
    %c0_i32_1 = arith.constant 0 : i32
    return %c0_i32, %c0_i32_0 : i32, i32
  }
  func.func @transform_4(%arg0: i32, %arg1: i32, %arg2: memref<1xi32, #tpu.memory_space<smem>>) -> (i32, i32) {
    %c0_i32 = arith.constant 0 : i32
    %c0_i32_0 = arith.constant 0 : i32
    %c0_i32_1 = arith.constant 0 : i32
    return %c0_i32, %c0_i32_0 : i32, i32
  }
  func.func @transform_5(%arg0: i32, %arg1: i32, %arg2: memref<1xi32, #tpu.memory_space<smem>>) -> (i32, i32) {
    %c0_i32 = arith.constant 0 : i32
    %c0_i32_0 = arith.constant 0 : i32
    %c0_i32_1 = arith.constant 0 : i32
    return %c0_i32, %c0_i32_0 : i32, i32
  }
  func.func @transform_6(%arg0: i32, %arg1: i32, %arg2: memref<1xi32, #tpu.memory_space<smem>>) -> (i32, i32) {
    %c0_i32 = arith.constant 0 : i32
    %c0_i32_0 = arith.constant 0 : i32
    %c0_i32_1 = arith.constant 0 : i32
    return %c0_i32, %c0_i32_0 : i32, i32
  }
  func.func @transform_7(%arg0: i32, %arg1: i32, %arg2: memref<1xi32, #tpu.memory_space<smem>>) -> (i32, i32) {
    %c0_i32 = arith.constant 0 : i32
    %c0_i32_0 = arith.constant 0 : i32
    return %arg0, %c0_i32 : i32, i32
  }
  func.func @transform_8(%arg0: i32, %arg1: i32, %arg2: memref<1xi32, #tpu.memory_space<smem>>) -> (i32, i32) {
    %c0_i32 = arith.constant 0 : i32
    %c0_i32_0 = arith.constant 0 : i32
    return %arg0, %c0_i32 : i32, i32
  }
}

</mosaic_0001>

<bundles_post_ra>
// kernel: ne.0
= control target key start
LH: loop header
LB: loop body
LE: loop exit
PB: predicated region body
PF: predicated region fallthrough
CT: control target
= control target key end

     0   :  { %s66_s0 = inlined_call_operand.<no memory space> [shape: s32[], index: 0, kind: input, shape index: {}]   ;;  %s67_s1 = inlined_call_operand.hbm [shape: s32[32], index: 1, kind: output, shape index: {}]  }
   0x1   :  { %v2_v0 = vstv %s66_s0 }
   0x2   :  { %3 = vsyncpa [#allocation1], 0  ;;  %4 = vst [vmem:[#allocation0] sm:$0x1] %v2_v0  ;;  %s40_s0 = smov [#allocation0]  }
   0x3   :  { %s9_s8 = sshll.u32 %s40_s0, 4  ;;  %s10_s8 = int_to_ptr.vmem [resolvable:$true] %s9_s8 }
   0x4   :  { %s16_s9 = scalar_lea.vmem %s10_s8, 16  ;;  %s20_s10 = scalar_lea.vmem %s10_s8, 32 }
   0x5   :  { %p17_p0 = scmp.ne.s32.totalorder %s10_s8, %s16_s9  ;;  %p21_p1 = scmp.lt.s32.totalorder %s10_s8, %s10_s8 }
   0x6   :  { %p22_p2 = scmp.lt.s32.totalorder %s20_s10, %s16_s9 }
   0x8   :  { %p23_p3 = por %p22_p2, %p21_p1 }
   0xa   :  { %p24_p4 = pnand %p23_p3, %p17_p0 }
   0xc   :  { %27 = shalt.err (!%p24_p4)
}
   0xd   :  { %s28_s13 = scalar_lea.hbm %s67_s1, 16 }
   0xe   :  { %p29_p5 = scmp.ne.s32.totalorder %s67_s1, %s28_s13  ;;  %p32_p6 = scmp.lt.u32.totalorder %s28_s13, %s67_s1 }
  0x10   :  { %p34_p7 = pnand %p32_p6, %p29_p5 }
  0x12   :  { %37 = shalt.err (!%p34_p7)
}
  0x13   :  { %12 = dma.vmem_to_hbm [thread:$0]  %s10_s8, 16, %s67_s1, [#allocation1]  }
  0x14   :  { %38 = dma.done.wait [#allocation1], 16  }
  0x15   :  { %39 = vsyncadd [#allocation1], 4294967280 }
  0x16   :  { %14 = vsyncpa [#allocation1], 1 }

// kernel: pre_segment.1
= control target key start
LH: loop header
LB: loop body
LE: loop exit
PB: predicated region body
PF: predicated region fallthrough
CT: control target
= control target key end

     0   :  { %vm35_vm0 = vcmask 64512   ;;  %v747_v0 = vmov 0.0   ;;  %s918_s0 = inlined_call_operand.<no memory space> [shape: s32[1], index: 0, kind: input, shape index: {}]   ;;  %s919_s1 = inlined_call_operand.vmem [shape: s8[32,128], index: 1, kind: input, shape index: {}]   ;;  %s920_s2 = inlined_call_operand.vmem [shape: bf16[128,8], index: 2, kind: input, shape index: {}]   ;;  %s921_s3 = inlined_call_operand.vmem [shape: f32[8,32], index: 3, kind: input, shape index: {}]   ;;  %s922_s4 = inlined_call_operand.vmem [shape: f32[1,32], index: 4, kind: input, shape index: {}]   ;;  %s923_s5 = inlined_call_operand.vmem [shape: f32[32,32], index: 5, kind: input, shape index: {}]   ;;  %s924_s6 = inlined_call_operand.vmem [shape: f32[1,32], index: 6, kind: input, shape index: {}]   ;;  %s925_s7 = inlined_call_operand.vmem [shape: f32[32,128], index: 7, kind: input, shape index: {}]   ;;  %s926_s8 = inlined_call_operand.vmem [shape: f32[32,32], index: 8, kind: output, shape index: {0}]   ;;  %s927_s9 = inlined_call_operand.vmem [shape: f32[32,128], index: 9, kind: output, shape index: {1}]  }
   0x1   :  { %36 = vst.msk [vmem:[#allocation2] sm:$0xff] %vm35_vm0, %v747_v0  ;;  %37 = vst.msk [vmem:[#allocation2 + $0x8] sm:$0xff] %vm35_vm0, %v747_v0  ;;  %p586_p0 = scmp.le.s32.totalorder %s918_s0, 0 }
   0x2   :  { %38 = vst.msk [vmem:[#allocation2 + $0x10] sm:$0xff] %vm35_vm0, %v747_v0  ;;  %39 = vst.msk [vmem:[#allocation2 + $0x18] sm:$0xff] %vm35_vm0, %v747_v0  ;;  %v723_v1 = vld [vmem:[%s920_s2] sm:$0xff] (!%p586_p0)   ;;  %v724_v2 = vld [vmem:[%s920_s2 + $0x8] sm:$0xff] (!%p586_p0)  }
   0x3   :  { %45 = sbr.rel (%p586_p0) target bundleno = 253 (0xfd), region = 37  ;;  %650 = vmatprep.subr.bf16.mxu0 (!%p586_p0), %v723_v1  ;;  %v725_v3 = vld [vmem:[%s920_s2 + $0x10] sm:$0xff] (!%p586_p0)   ;;  %v726_v4 = vld [vmem:[%s920_s2 + $0x18] sm:$0xff] (!%p586_p0)   ;;  %v46_v5 = vld [vmem:[%s919_s1] sm:$0x3] (!%p586_p0) }
   0x4   :  { %651 = vmatpush3.bf16.msra.mxu0 (!%p586_p0), %v723_v1  ;;  %v47_v6 = vld [vmem:[%s919_s1 + $0x2] sm:$0x3] (!%p586_p0)  ;;  %v50_v7 = vunpack.c.l.s8.bf16 (!%p586_p0), %v46_v5  ;;  %v728_v11 = vld [vmem:[%s920_s2 + $0x28] sm:$0xff] (!%p586_p0)   ;;  %v729_v12 = vld [vmem:[%s920_s2 + $0x30] sm:$0xff] (!%p586_p0)  }
   0x5   :  { %652 = vmatprep.subr.bf16.mxu0 (!%p586_p0), %v724_v2  ;;  %v51_v8 = vunpack.c.l.s8.bf16 (!%p586_p0), %v47_v6  ;;  %v727_v10 = vld [vmem:[%s920_s2 + $0x20] sm:$0xff] (!%p586_p0)   ;;  %v730_v15 = vld [vmem:[%s920_s2 + $0x38] sm:$0xff] (!%p586_p0)  }
   0x6   :  { %v48_v13 = vld [vmem:[%s919_s1 + $0x4] sm:$0x3] (!%p586_p0)  ;;  %v49_v14 = vld [vmem:[%s919_s1 + $0x6] sm:$0x3] (!%p586_p0) }
   0x7   :  { %v587_v9 = vcombine.low (!%p586_p0), %v50_v7, %v51_v8  ;;  %v52_v16 = vunpack.c.l.s8.bf16 (!%p586_p0), %v48_v13  ;;  %v53_v17 = vunpack.c.l.s8.bf16 (!%p586_p0), %v49_v14 }
   0x8   :  { %653 = vmatpush3.bf16.msra.mxu0 (!%p586_p0), %v724_v2  ;;  %v75_v20 = vld [vmem:[#allocation2] sm:$0xff] (!%p586_p0)  ;;  %v76_v25 = vld [vmem:[#allocation2 + $0x8] sm:$0xff] (!%p586_p0) }
   0x9   :  { %654 = vmatprep.subr.bf16.mxu0 (!%p586_p0), %v725_v3  ;;  %666 = vmatprep.mubr.bf16.mxu0 (!%p586_p0), %v587_v9  ;;  %v588_v18 = vcombine.low (!%p586_p0), %v52_v16, %v53_v17  ;;  %v77_v19 = vld [vmem:[#allocation2 + $0x10] sm:$0xff] (!%p586_p0)  ;;  %v78_v22 = vld [vmem:[#allocation2 + $0x18] sm:$0xff] (!%p586_p0) }
   0xc   :  { %655 = vmatpush3.bf16.msra.mxu0 %v725_v3 }
   0xd   :  { %656 = vmatprep.subr.bf16.mxu0 %v726_v4 }
  0x10   :  { %657 = vmatpush3.bf16.msra.mxu0 %v726_v4 }
  0x11   :  { %658 = vmatprep.subr.bf16.mxu0 %v727_v10 }
  0x14   :  { %659 = vmatpush3.bf16.msra.mxu0 %v727_v10 }
  0x15   :  { %660 = vmatprep.subr.bf16.mxu0 %v728_v11 }
  0x18   :  { %661 = vmatpush3.bf16.msra.mxu0 %v728_v11 }
  0x19   :  { %662 = vmatprep.subr.bf16.mxu0 %v729_v12 }
  0x1c   :  { %663 = vmatpush3.bf16.msra.mxu0 %v729_v12 }
  0x1d   :  { %664 = vmatprep.subr.bf16.mxu0 %v730_v15 }
  0x20   :  { %665 = vmatpush3.bf16.msra.mxu0 %v730_v15 }
  0x23   :  { %667 = vmatmul.mubr.bf16.vlgmr.msra.gmra.mrb[0].mxu0 %v588_v18 }
  0xf6   :  { %v668_v21 = vpop.f32.mrb[0].mxu0 }
  0xf7   :  { %v190_v23 = vadd.f32 %v668_v21, %v77_v19  ;;  %v173_v24 = vpop.f32.mrb[1].mxu0 }
  0xf8   :  { %v188_v26 = vadd.f32 %v173_v24, %v75_v20  ;;  %v669_v27 = vpop.f32.mrb[2].mxu0 }
  0xf9   :  { %195 = vst.msk [vmem:[#allocation2 + $0x10] sm:$0xff] %vm35_vm0, %v190_v23  ;;  %v191_v28 = vadd.f32 %v669_v27, %v78_v22  ;;  %v176_v29 = vpop.f32.mrb[3].mxu0 }
  0xfa   :  { %193 = vst.msk [vmem:[#allocation2] sm:$0xff] %vm35_vm0, %v188_v26  ;;  %v189_v30 = vadd.f32 %v176_v29, %v76_v25 }
  0xfb   :  { %196 = vst.msk [vmem:[#allocation2 + $0x18] sm:$0xff] %vm35_vm0, %v191_v28 }
  0xfc   :  { %194 = vst.msk [vmem:[#allocation2 + $0x8] sm:$0xff] %vm35_vm0, %v189_v30 }
  0xfd PF:  { %v204_v31 = vld [vmem:[%s921_s3] sm:$0xff]  ;;  %v335_v37 = vld [vmem:[%s923_s5 + $0x8] sm:$0xff]  ;;  %v336_v38 = vld [vmem:[%s923_s5 + $0x10] sm:$0xff]  ;;  %vm345_vm1 = vcmask 261120  }
  0xfe   :  { %670 = vmatprep.subr.mxu0 %v204_v31  ;;  %v334_v36 = vld [vmem:[%s923_s5] sm:$0xff]  ;;  %v337_v40 = vld [vmem:[%s923_s5 + $0x18] sm:$0xff]  ;;  %v472_v8 = vld [vmem:[%s925_s7 + $0x8] sm:$0xff] }
  0xff   :  { %671 = vmatpush3.msra.mxu0 %v204_v31  ;;  %v706_v39 = vpack.c.bf16 %v335_v37, %v334_v36  ;;  %v710_v41 = vpack.c.bf16 %v337_v40, %v336_v38  ;;  %v597_v42 = vld [vmem:[%s922_s4] ss:$0 sm:$0xff]  ;;  %v473_v10 = vld [vmem:[%s925_s7 + $0x10] sm:$0xff]  ;;  %v474_v11 = vld [vmem:[%s925_s7 + $0x18] sm:$0xff] }
 0x100   :  { %v202_v34 = vld [vmem:[#allocation2 + $0x10] sm:$0xff]  ;;  %v471_v7 = vld [vmem:[%s925_s7] sm:$0xff]  ;;  %v718_v12 = vpack.c.bf16 %v474_v11, %v473_v10 }
 0x101   :  { %v200_v32 = vld [vmem:[#allocation2] sm:$0xff]  ;;  %707 = vmatprep.subr.bf16.mxu1 %v706_v39  ;;  %v714_v9 = vpack.c.bf16 %v472_v8, %v471_v7 }
 0x102   :  { %672 = vmatprep.mubr.msk.f32.mxu0 %vm35_vm0, %v200_v32  ;;  %v203_v35 = vld [vmem:[#allocation2 + $0x18] sm:$0xff]  ;;  %709 = vmatpush3.bf16.msra.mxu1 %v706_v39  ;;  %v606_v13 = vld [vmem:[%s924_s6] ss:$0 sm:$0xff] }
 0x103   :  { %v201_v33 = vld [vmem:[#allocation2 + $0x8] sm:$0xff]  ;;  %711 = vmatprep.subr.bf16.mxu1 %v710_v41  ;;  %715 = vmatprep.subr.bf16.mxu0 %v714_v9 }
 0x104   :  { %673 = vmatmul.mubr.msk.f32.vlgmr.msra.gmra.mrb[0].mxu0 %vm35_vm0, %v201_v33 }
 0x105   :  { %675 = vmatprep.mubr.msk.f32.mxu0 %vm35_vm0, %v202_v34  ;;  %717 = vmatpush3.bf16.msra.mxu0 %v714_v9 }
 0x106   :  { %713 = vmatpush3.bf16.msra.mxu1 %v710_v41  ;;  %719 = vmatprep.subr.bf16.mxu0 %v718_v12 }
 0x108   :  { %676 = vmatmul.mubr.msk.f32.gmra.mrb[2].mxu0 %vm35_vm0, %v203_v35 }
 0x109   :  { %721 = vmatpush3.bf16.msra.mxu0 %v718_v12 }
 0x1d7   :  { %v674_v43 = vpop.f32.mrb[0].mxu0 }
 0x1d8   :  { %v297_v44 = vadd.f32 %v674_v43, %v597_v42  ;;  %v291_v45 = vpop.f32.mrb[1].mxu0 }
 0x1d9   :  { %v292_v46 = vadd.f32 %v597_v42, %v291_v45 }
 0x1da   :  { %v315_v47 = vmin.f32 %v297_v44, 0.0  ;;  %vm311_vm3 = vcmp.gt.f32.partialorder %v297_v44, 0.0 }
 0x1db   :  { %v314_v48 = vmin.f32 %v292_v46, 0.0  ;;  %v677_v49 = vpop.f32.mrb[2].mxu0  ;;  %vm310_vm2 = vcmp.gt.f32.partialorder %v292_v46, 0.0 }
 0x1dc   :  { %v320_v50 = vmul.f32 1.442695, %v315_v47  ;;  %v307_v51 = vadd.f32 %v677_v49, %v597_v42  ;;  %v301_v52 = vpop.f32.mrb[3].mxu0 }
 0x1dd   :  { %v318_v53 = vmul.f32 1.442695, %v314_v48  ;;  %v302_v54 = vadd.f32 %v597_v42, %v301_v52 }
 0x1de   :  { %731 = vpow2.f32 %v320_v50  ;;  %v317_v55 = vmin.f32 %v307_v51, 0.0  ;;  %vm313_vm5 = vcmp.gt.f32.partialorder %v307_v51, 0.0 }
 0x1df   :  { %733 = vpow2.f32 %v318_v53  ;;  %v316_v56 = vmin.f32 %v302_v54, 0.0  ;;  %vm312_vm4 = vcmp.gt.f32.partialorder %v302_v54, 0.0 }
 0x1e0   :  { %v324_v57 = vmul.f32 1.442695, %v317_v55 }
 0x1e1   :  { %v322_v58 = vmul.f32 1.442695, %v316_v56 }
 0x1e2   :  { %735 = vpow2.f32 %v324_v57 }
 0x1e3   :  { %737 = vpow2.f32 %v322_v58 }
 0x1e8   :  { %v732_v59 = vpop.eup %731 }
 0x1e9   :  { %v734_v60 = vpop.eup %733  ;;  %v603_v61 = vadd.f32 -1.0, %v732_v59 }
 0x1ea   :  { %v602_v62 = vadd.f32 -1.0, %v734_v60 }
 0x1eb   :  { %v331_v2 = vsel %vm311_vm3, %v297_v44, %v603_v61 }
 0x1ec   :  { %v736_v63 = vpop.eup %735  ;;  %v330_v0 = vsel %vm310_vm2, %v292_v46, %v602_v62 }
 0x1ed   :  { %v738_v1 = vpop.eup %737  ;;  %686 = vmatprep.mubr.msk.f32.mxu1 %vm345_vm1, %v330_v0  ;;  %v605_v3 = vadd.f32 -1.0, %v736_v63 }
 0x1ee   :  { %687 = vmatmul.mubr.msk.f32.vlgmr.msra.gmra.mrb[0].mxu1 %vm345_vm1, %v331_v2  ;;  %v604_v4 = vadd.f32 -1.0, %v738_v1 }
 0x1ef   :  { %v333_v6 = vsel %vm313_vm5, %v307_v51, %v605_v3 }
 0x1f0   :  { %v332_v5 = vsel %vm312_vm4, %v302_v54, %v604_v4 }
 0x1f1   :  { %689 = vmatprep.mubr.msk.f32.mxu1 %vm345_vm1, %v332_v5 }
 0x1f2   :  { %690 = vmatmul.mubr.msk.f32.gmra.mrb[2].mxu1 %vm345_vm1, %v333_v6 }
 0x2c1   :  { %v688_v14 = vpop.f32.mrb[0].mxu1 }
 0x2c2   :  { %v430_v15 = vadd.f32 %v688_v14, %v606_v13  ;;  %v424_v16 = vpop.f32.mrb[1].mxu1 }
 0x2c3   :  { %v425_v17 = vadd.f32 %v606_v13, %v424_v16 }
 0x2c4   :  { %v448_v18 = vmin.f32 %v430_v15, 0.0  ;;  %vm444_vm6 = vcmp.gt.f32.partialorder %v430_v15, 0.0 }
 0x2c5   :  { %v447_v19 = vmin.f32 %v425_v17, 0.0  ;;  %v691_v20 = vpop.f32.mrb[2].mxu1  ;;  %vm443_vm7 = vcmp.gt.f32.partialorder %v425_v17, 0.0 }
 0x2c6   :  { %v453_v21 = vmul.f32 1.442695, %v448_v18  ;;  %v440_v22 = vadd.f32 %v691_v20, %v606_v13  ;;  %v434_v23 = vpop.f32.mrb[3].mxu1 }
 0x2c7   :  { %v451_v24 = vmul.f32 1.442695, %v447_v19  ;;  %v435_v25 = vadd.f32 %v606_v13, %v434_v23 }
 0x2c8   :  { %739 = vpow2.f32 %v453_v21  ;;  %v450_v26 = vmin.f32 %v440_v22, 0.0  ;;  %vm446_vm8 = vcmp.gt.f32.partialorder %v440_v22, 0.0 }
 0x2c9   :  { %741 = vpow2.f32 %v451_v24  ;;  %v449_v27 = vmin.f32 %v435_v25, 0.0  ;;  %vm445_vm9 = vcmp.gt.f32.partialorder %v435_v25, 0.0 }
 0x2ca   :  { %v457_v28 = vmul.f32 1.442695, %v450_v26 }
 0x2cb   :  { %v455_v29 = vmul.f32 1.442695, %v449_v27 }
 0x2cc   :  { %743 = vpow2.f32 %v457_v28 }
 0x2cd   :  { %745 = vpow2.f32 %v455_v29 }
 0x2d2   :  { %v740_v30 = vpop.eup %739 }
 0x2d3   :  { %v742_v31 = vpop.eup %741  ;;  %v612_v32 = vadd.f32 -1.0, %v740_v30 }
 0x2d4   :  { %v611_v33 = vadd.f32 -1.0, %v742_v31 }
 0x2d5   :  { %v464_v34 = vsel %vm444_vm6, %v430_v15, %v612_v32 }
 0x2d6   :  { %v744_v35 = vpop.eup %743  ;;  %468 = vst.msk [vmem:[%s926_s8 + $0x8] sm:$0xff] %vm345_vm1, %v464_v34  ;;  %v463_v36 = vsel %vm443_vm7, %v425_v17, %v611_v33 }
 0x2d7   :  { %v746_v37 = vpop.eup %745  ;;  %467 = vst.msk [vmem:[%s926_s8] sm:$0xff] %vm345_vm1, %v463_v36  ;;  %700 = vmatprep.mubr.msk.f32.mxu0 %vm345_vm1, %v463_v36  ;;  %v614_v38 = vadd.f32 -1.0, %v744_v35 }
 0x2d8   :  { %701 = vmatmul.mubr.msk.f32.vlgmr.msra.gmra.mrb[4].mxu0 %vm345_vm1, %v464_v34  ;;  %v613_v39 = vadd.f32 -1.0, %v746_v37 }
 0x2d9   :  { %v466_v40 = vsel %vm446_vm8, %v440_v22, %v614_v38 }
 0x2da   :  { %v465_v41 = vsel %vm445_vm9, %v435_v25, %v613_v39  ;;  %470 = vst.msk [vmem:[%s926_s8 + $0x18] sm:$0xff] %vm345_vm1, %v466_v40 }
 0x2db   :  { %469 = vst.msk [vmem:[%s926_s8 + $0x10] sm:$0xff] %vm345_vm1, %v465_v41  ;;  %703 = vmatprep.mubr.msk.f32.mxu0 %vm345_vm1, %v465_v41 }
 0x2dc   :  { %704 = vmatmul.mubr.msk.f32.gmra.mrb[6].mxu0 %vm345_vm1, %v466_v40 }
 0x3ab   :  { %v702_v42 = vpop.f32.mrb[4].mxu0 }
 0x3ac   :  { %573 = vst [vmem:[%s927_s9 + $0x8] sm:$0xff] %v702_v42  ;;  %v553_v43 = vpop.f32.mrb[5].mxu0 }
 0x3ad   :  { %572 = vst [vmem:[%s927_s9] sm:$0xff] %v553_v43 }
 0x3af   :  { %v705_v44 = vpop.f32.mrb[6].mxu0 }
 0x3b0   :  { %575 = vst [vmem:[%s927_s9 + $0x18] sm:$0xff] %v705_v44  ;;  %v563_v45 = vpop.f32.mrb[7].mxu0 }
 0x3b1   :  { %574 = vst [vmem:[%s927_s9 + $0x10] sm:$0xff] %v563_v45 }

</bundles_post_ra>
